<compile_context>
chip_gen: v7x
topology: tpu7x:2x2x1
jax: 0.10.0
libtpu: 0.0.40
codegen_flags: <defaults>
</compile_context>

<pallas_src>
import jax
import jax.numpy as jnp
from jax.experimental import pallas as pl
from jax.experimental.pallas import tpu as pltpu

BN_EPS = 1e-5


def _basic_block_kernel(x_ref, b1_ref, b2_ref, bias1_ref, bias2_ref, o_ref,
                        xpad, midpad):
    """Fused BasicBlock; B images batched into the matmul M dimension per step.

    x_ref    : (B, H, W*Cin)        f32   lane-dense input block (also the residual)
    b1_ref   : (3, W*Cin,  W*Cmid)  bf16  banded conv1 weights, bn1 scale folded in
    b2_ref   : (3, W*Cmid, W*Cout)  bf16  banded conv2 weights, bn2 scale folded in
    bias1_ref: (1, W*Cmid)          f32   folded bn1 bias, tiled over W
    bias2_ref: (1, W*Cout)          f32   folded bn2 bias, tiled over W
    o_ref    : (B, H, W*Cout)       f32
    xpad     : (B*(H+2)+2, W*Cin)   bf16  padded input slab (scratch)
    midpad   : (B*(H+2)+2, W*Cmid)  bf16  padded intermediate slab (scratch)

    Slab row layout: row 1 + b*(H+2) + j holds padded-row j of image b (j=0..H+1);
    rows {k*(H+2), k*(H+2)+1 : k=0..B} are zero halos (incl. first/last rows).
    A 3x3 'SAME' conv is then 3 MXU matmuls on kh-shifted slices slab[kh : kh+M];
    the kw taps + horizontal padding live inside the banded weight matrices.
    """
    batch, H, wcin = x_ref.shape
    wcmid = midpad.shape[1]
    hp = H + 2
    m_rows = batch * hp                       # matmul M dimension

    # ---------------- stage 1: conv1 (+bn1 scale) + bias + relu ----------------
    # Zero halo rows (every step: scratch is per-core, interiors rewritten below).
    for k in range(batch + 1):
        xpad[k * hp: k * hp + 2, :] = jnp.zeros((2, wcin), jnp.bfloat16)
    # Write image interiors; single f32->bf16 cast per activation row.
    for b in range(batch):
        xpad[b * hp + 2: b * hp + 2 + H, :] = x_ref[b].astype(jnp.bfloat16)

    acc1 = jnp.dot(xpad[0:m_rows, :], b1_ref[0],
                   preferred_element_type=jnp.float32)
    acc1 = acc1 + jnp.dot(xpad[1:1 + m_rows, :], b1_ref[1],
                          preferred_element_type=jnp.float32)
    acc1 = acc1 + jnp.dot(xpad[2:2 + m_rows, :], b1_ref[2],
                          preferred_element_type=jnp.float32)
    mid = jnp.maximum(acc1 + bias1_ref[...], 0.0).astype(jnp.bfloat16)

    # ---------------- stage 2: conv2 (+bn2 scale) + bias + residual + relu -----
    midpad[1:1 + m_rows, :] = mid
    # Re-zero halo rows AFTER the mid store: they received garbage rows of `mid`
    # (rows computed at halo positions) and must be exact zeros for stage 2.
    for k in range(batch + 1):
        midpad[k * hp: k * hp + 2, :] = jnp.zeros((2, wcmid), jnp.bfloat16)

    acc2 = jnp.dot(midpad[0:m_rows, :], b2_ref[0],
                   preferred_element_type=jnp.float32)
    acc2 = acc2 + jnp.dot(midpad[1:1 + m_rows, :], b2_ref[1],
                          preferred_element_type=jnp.float32)
    acc2 = acc2 + jnp.dot(midpad[2:2 + m_rows, :], b2_ref[2],
                          preferred_element_type=jnp.float32)

    bias2 = bias2_ref[...]
    for b in range(batch):
        rows = acc2[b * hp + 1: b * hp + 1 + H, :]          # interior rows of image b
        o_ref[b] = jnp.maximum(rows + bias2 + x_ref[b], 0.0).astype(o_ref.dtype)


def _banded_conv_weights(w, width):
    """(3, 3, Cin, Cout) HWIO 3x3 weights -> (3, width*Cin, width*Cout) banded matrices.

    band[kh][wi*Cin + ci, wo*Cout + co] = w[kh, wi - wo + 1, ci, co]  if |wi - wo| <= 1
                                          0                            otherwise
    so  x_row_flat @ band[kh]  performs all kw taps for a fixed kh with 'SAME'
    horizontal padding folded in (out-of-range taps are exact zeros).
    """
    _, _, cin, cout = w.shape
    wi = jnp.arange(width)[:, None]
    wo = jnp.arange(width)[None, :]
    dk = wi - wo + 1                                        # tap index kw
    valid = ((dk >= 0) & (dk <= 2)).astype(w.dtype)         # (W, W)
    dk_c = jnp.clip(dk, 0, 2)
    bands = []
    for kh in range(3):
        blk = w[kh][dk_c] * valid[:, :, None, None]         # (W, W, Cin, Cout)
        bands.append(blk.transpose(0, 2, 1, 3).reshape(width * cin, width * cout))
    return jnp.stack(bands)


def _fold_bn(gamma, beta, mean, var, eps=BN_EPS):
    scale = gamma / jnp.sqrt(var + eps)
    bias = beta - mean * scale
    return scale, bias


def prepare_params(params, width):
    """One-time weight transform (run OUTSIDE the per-forward path).

    Folds BN scale into the conv weights, bands them, and tiles the BN biases.
    """
    s1, b1 = _fold_bn(*params["bn1"])
    s2, b2 = _fold_bn(*params["bn2"])
    w1 = params["w1"].astype(jnp.float32) * s1[None, None, None, :]
    w2 = params["w2"].astype(jnp.float32) * s2[None, None, None, :]
    return {
        "band1": _banded_conv_weights(w1, width).astype(jnp.bfloat16),
        "band2": _banded_conv_weights(w2, width).astype(jnp.bfloat16),
        "bias1": jnp.tile(b1, width)[None, :].astype(jnp.float32),
        "bias2": jnp.tile(b2, width)[None, :].astype(jnp.float32),
    }


def basic_block_forward_nhwc(x_nhwc, prep, *, images_per_step=None):
    """BasicBlock forward on NHWC activations (lane-dense (H, W*C) slabs)."""
    n, h, w, cin = x_nhwc.shape
    band1, band2 = prep["band1"], prep["band2"]
    bias1, bias2 = prep["bias1"], prep["bias2"]
    wcin = w * cin
    wcmid = band1.shape[2]
    wcout = band2.shape[2]
    assert band1.shape[1] == wcin, (band1.shape, wcin)
    assert wcout == wcin, "identity residual requires inplanes == planes (no downsample)"
    # Fail loudly off the lane-dense fast path instead of silently hitting masked stores.
    assert wcin % 128 == 0 and wcmid % 128 == 0, (wcin, wcmid)

    if images_per_step is None:
        if n % 2 == 0:
            # grid=(2,) by default: both v7x TensorCores busy, max images per matmul M.
            images_per_step = n // 2
            while images_per_step % 2 == 0 and images_per_step * (h + 2) > 512:
                images_per_step //= 2
        else:
            images_per_step = 1
    assert n % images_per_step == 0, (n, images_per_step)
    bsz = images_per_step
    grid_n = n // bsz
    hp = h + 2

    x_flat = x_nhwc.reshape(n, h, wcin).astype(jnp.float32)

    cmid = wcmid // w
    cout = wcout // w
    # True convolution FLOPs (not banded-matmul FLOPs over structural zeros).
    flops = 2 * n * h * w * 9 * (cin * cmid + cmid * cout)
    bytes_accessed = ((n * h * (wcin + wcout)) * 4
                      + (band1.size + band2.size) * 2
                      + (bias1.size + bias2.size) * 4)

    out_flat = pl.pallas_call(
        _basic_block_kernel,
        out_shape=jax.ShapeDtypeStruct((n, h, wcout), jnp.float32),
        grid=(grid_n,),
        in_specs=[
            pl.BlockSpec((bsz, h, wcin), lambda i: (i, 0, 0)),
            pl.BlockSpec((3, wcin, wcmid), lambda i: (0, 0, 0)),
            pl.BlockSpec((3, wcmid, wcout), lambda i: (0, 0, 0)),
            pl.BlockSpec((1, wcmid), lambda i: (0, 0)),
            pl.BlockSpec((1, wcout), lambda i: (0, 0)),
        ],
        out_specs=pl.BlockSpec((bsz, h, wcout), lambda i: (i, 0, 0)),
        scratch_shapes=[
            pltpu.VMEM((bsz * hp + 2, wcin), jnp.bfloat16),
            pltpu.VMEM((bsz * hp + 2, wcmid), jnp.bfloat16),
        ],
        compiler_params=pltpu.CompilerParams(
            dimension_semantics=("parallel",),
            vmem_limit_bytes=32 * 1024 * 1024),
        cost_estimate=pl.CostEstimate(
            flops=flops, transcendentals=0, bytes_accessed=bytes_accessed),
    )(x_flat, band1, band2, bias1, bias2)

    return out_flat.reshape(n, h, w, cout)


def basic_block_forward(x_nchw, prep, **kw):
    """PyTorch-interface (NCHW) adapter around the NHWC kernel."""
    x_nhwc = jnp.transpose(x_nchw, (0, 2, 3, 1))
    out = basic_block_forward_nhwc(x_nhwc, prep, **kw)
    return jnp.transpose(out, (0, 3, 1, 2))


def _reference_forward(x_nchw, params):
    """Plain-JAX reference (lax.conv, bf16 operands / f32 accumulation like the kernel)."""
    x = jnp.transpose(x_nchw, (0, 2, 3, 1)).astype(jnp.float32)

    def conv(a, wgt):
        return jax.lax.conv_general_dilated(
            a.astype(jnp.bfloat16), wgt.astype(jnp.bfloat16),
            window_strides=(1, 1), padding="SAME",
            dimension_numbers=("NHWC", "HWIO", "NHWC"),
            preferred_element_type=jnp.float32)

    s1, b1 = _fold_bn(*params["bn1"])
    o = jnp.maximum(conv(x, params["w1"]) * s1 + b1, 0.0)
    s2, b2 = _fold_bn(*params["bn2"])
    o = jnp.maximum(conv(o, params["w2"]) * s2 + b2 + x, 0.0)
    return jnp.transpose(o, (0, 3, 1, 2))


def make_params(key, inplanes, planes):
    ks = jax.random.split(key, 10)

    def bn(k0, k1, k2, k3, c):
        gamma = jax.random.uniform(k0, (c,), jnp.float32, 0.5, 1.5)
        beta = jax.random.normal(k1, (c,), jnp.float32) * 0.1
        mean = jax.random.normal(k2, (c,), jnp.float32) * 0.1
        var = jax.random.uniform(k3, (c,), jnp.float32, 0.5, 1.5)
        return (gamma, beta, mean, var)

    return {
        "w1": jax.random.normal(ks[0], (3, 3, inplanes, planes), jnp.float32) * 0.1,
        "bn1": bn(ks[1], ks[2], ks[3], ks[4], planes),
        "w2": jax.random.normal(ks[5], (3, 3, planes, planes), jnp.float32) * 0.1,
        "bn2": bn(ks[6], ks[7], ks[8], ks[9], planes),
    }


if __name__ == "__main__":
    key = jax.random.PRNGKey(0)
    kx, kp = jax.random.split(key)

    # inplanes == planes -> identity residual; W*C = 128 (lane-dense slabs).
    # N=4 -> grid=(2,) with 2 images batched into each matmul (M = 2*(H+2) = 36).
    N, C, H, W = 4, 8, 16, 16
    x = jax.random.normal(kx, (N, C, H, W), jnp.float32)
    params = make_params(kp, inplanes=C, planes=C)

    prep = prepare_params(params, W)   # fold BN + band weights once, outside the fwd path

    out = jax.block_until_ready(basic_block_forward(x, prep))
    ref = jax.block_until_ready(_reference_forward(x, params))

    assert out.shape == (N, C, H, W), out.shape
    max_err = float(jnp.max(jnp.abs(out - ref)))
    assert jnp.allclose(out, ref, atol=2e-2, rtol=2e-2), max_err
    print("KERNEL_OK")
</pallas_src>

<mosaic_0001>
module attributes {stable_mosaic.version = 11 : i64} {
  func.func @_basic_block_kernel(%arg0: i32, %arg1: memref<2x16x128xf32, #tpu.memory_space<vmem>>, %arg2: memref<3x128x128xbf16, #tpu.memory_space<vmem>>, %arg3: memref<3x128x128xbf16, #tpu.memory_space<vmem>>, %arg4: memref<1x128xf32, #tpu.memory_space<vmem>>, %arg5: memref<1x128xf32, #tpu.memory_space<vmem>>, %arg6: memref<2x16x128xf32, #tpu.memory_space<vmem>>, %arg7: memref<38x128xbf16, #tpu.memory_space<vmem>>, %arg8: memref<38x128xbf16, #tpu.memory_space<vmem>>) attributes {dimension_semantics = [#tpu.dimension_semantics<parallel>], iteration_bounds = array<i64: 2>, scalar_prefetch = 0 : i64, scratch_operands = 2 : i64, tpu.core_type = #tpu.core_type<tc>, window_params = [{transform_indices = @transform_0, window_bounds = array<i64: 2, 16, 128>}, {pipeline_mode = #tpu.pipeline_mode<synchronous>, transform_indices = @transform_1, window_bounds = array<i64: 3, 128, 128>}, {pipeline_mode = #tpu.pipeline_mode<synchronous>, transform_indices = @transform_2, window_bounds = array<i64: 3, 128, 128>}, {pipeline_mode = #tpu.pipeline_mode<synchronous>, transform_indices = @transform_3, window_bounds = array<i64: 1, 128>}, {pipeline_mode = #tpu.pipeline_mode<synchronous>, transform_indices = @transform_4, window_bounds = array<i64: 1, 128>}, {transform_indices = @transform_5, window_bounds = array<i64: 2, 16, 128>}]} {
    %cst = arith.constant 0.000000e+00 : bf16
    %0 = vector.broadcast %cst : bf16 to vector<2x128xbf16>
    %c0 = arith.constant 0 : index
    %c0_0 = arith.constant 0 : index
    %1 = vector.load %arg7[%c0, %c0_0] : memref<38x128xbf16, #tpu.memory_space<vmem>>, vector<2x128xbf16>
    tpu.vector_store %arg7[%c0, %c0_0], %0 {strides = array<i32>} : memref<38x128xbf16, #tpu.memory_space<vmem>>, vector<2x128xbf16>,
    %cst_1 = arith.constant 0.000000e+00 : bf16
    %2 = vector.broadcast %cst_1 : bf16 to vector<2x128xbf16>
    %c18 = arith.constant 18 : index
    %c0_2 = arith.constant 0 : index
    %3 = vector.load %arg7[%c18, %c0_2] : memref<38x128xbf16, #tpu.memory_space<vmem>>, vector<2x128xbf16>
    tpu.vector_store %arg7[%c18, %c0_2], %2 {strides = array<i32>} : memref<38x128xbf16, #tpu.memory_space<vmem>>, vector<2x128xbf16>,
    %cst_3 = arith.constant 0.000000e+00 : bf16
    %4 = vector.broadcast %cst_3 : bf16 to vector<2x128xbf16>
    %c36 = arith.constant 36 : index
    %c0_4 = arith.constant 0 : index
    %5 = vector.load %arg7[%c36, %c0_4] : memref<38x128xbf16, #tpu.memory_space<vmem>>, vector<2x128xbf16>
    tpu.vector_store %arg7[%c36, %c0_4], %4 {strides = array<i32>} : memref<38x128xbf16, #tpu.memory_space<vmem>>, vector<2x128xbf16>,
    %c0_5 = arith.constant 0 : index
    %c0_6 = arith.constant 0 : index
    %c0_7 = arith.constant 0 : index
    %6 = vector.load %arg1[%c0_5, %c0_6, %c0_7] : memref<2x16x128xf32, #tpu.memory_space<vmem>>, vector<1x16x128xf32>
    %7 = vector.shape_cast %6 : vector<1x16x128xf32> to vector<16x128xf32>
    %8 = arith.truncf %7 : vector<16x128xf32> to vector<16x128xbf16>
    %c2 = arith.constant 2 : index
    %c0_8 = arith.constant 0 : index
    %9 = vector.load %arg7[%c2, %c0_8] : memref<38x128xbf16, #tpu.memory_space<vmem>>, vector<16x128xbf16>
    tpu.vector_store %arg7[%c2, %c0_8], %8 {strides = array<i32>} : memref<38x128xbf16, #tpu.memory_space<vmem>>, vector<16x128xbf16>,
    %c1 = arith.constant 1 : index
    %c0_9 = arith.constant 0 : index
    %c0_10 = arith.constant 0 : index
    %10 = vector.load %arg1[%c1, %c0_9, %c0_10] : memref<2x16x128xf32, #tpu.memory_space<vmem>>, vector<1x16x128xf32>
    %11 = vector.shape_cast %10 : vector<1x16x128xf32> to vector<16x128xf32>
    %12 = arith.truncf %11 : vector<16x128xf32> to vector<16x128xbf16>
    %c20 = arith.constant 20 : index
    %c0_11 = arith.constant 0 : index
    %13 = vector.load %arg7[%c20, %c0_11] : memref<38x128xbf16, #tpu.memory_space<vmem>>, vector<16x128xbf16>
    tpu.vector_store %arg7[%c20, %c0_11], %12 {strides = array<i32>} : memref<38x128xbf16, #tpu.memory_space<vmem>>, vector<16x128xbf16>,
    %c0_12 = arith.constant 0 : index
    %c0_13 = arith.constant 0 : index
    %14 = vector.load %arg7[%c0_12, %c0_13] : memref<38x128xbf16, #tpu.memory_space<vmem>>, vector<36x128xbf16>
    %c0_14 = arith.constant 0 : index
    %c0_15 = arith.constant 0 : index
    %c0_16 = arith.constant 0 : index
    %15 = vector.load %arg2[%c0_14, %c0_15, %c0_16] : memref<3x128x128xbf16, #tpu.memory_space<vmem>>, vector<1x128x128xbf16>
    %16 = vector.shape_cast %15 : vector<1x128x128xbf16> to vector<128x128xbf16>
    %cst_17 = arith.constant dense<0.000000e+00> : vector<36x128xf32>
    %17 = tpu.matmul %14, %16, %cst_17 {dimension_numbers = #tpu.dot_dimension_numbers<[1], [0], [0], [1], [0, 0, 1, 1], [], []>} : vector<36x128xbf16>, vector<128x128xbf16>, vector<36x128xf32> -> vector<36x128xf32>
    %c1_18 = arith.constant 1 : index
    %c0_19 = arith.constant 0 : index
    %18 = vector.load %arg7[%c1_18, %c0_19] : memref<38x128xbf16, #tpu.memory_space<vmem>>, vector<36x128xbf16>
    %c1_20 = arith.constant 1 : index
    %c0_21 = arith.constant 0 : index
    %c0_22 = arith.constant 0 : index
    %19 = vector.load %arg2[%c1_20, %c0_21, %c0_22] : memref<3x128x128xbf16, #tpu.memory_space<vmem>>, vector<1x128x128xbf16>
    %20 = vector.shape_cast %19 : vector<1x128x128xbf16> to vector<128x128xbf16>
    %cst_23 = arith.constant dense<0.000000e+00> : vector<36x128xf32>
    %21 = tpu.matmul %18, %20, %cst_23 {dimension_numbers = #tpu.dot_dimension_numbers<[1], [0], [0], [1], [0, 0, 1, 1], [], []>} : vector<36x128xbf16>, vector<128x128xbf16>, vector<36x128xf32> -> vector<36x128xf32>
    %22 = arith.addf %17, %21 : vector<36x128xf32>
    %c2_24 = arith.constant 2 : index
    %c0_25 = arith.constant 0 : index
    %23 = vector.load %arg7[%c2_24, %c0_25] : memref<38x128xbf16, #tpu.memory_space<vmem>>, vector<36x128xbf16>
    %c2_26 = arith.constant 2 : index
    %c0_27 = arith.constant 0 : index
    %c0_28 = arith.constant 0 : index
    %24 = vector.load %arg2[%c2_26, %c0_27, %c0_28] : memref<3x128x128xbf16, #tpu.memory_space<vmem>>, vector<1x128x128xbf16>
    %25 = vector.shape_cast %24 : vector<1x128x128xbf16> to vector<128x128xbf16>
    %cst_29 = arith.constant dense<0.000000e+00> : vector<36x128xf32>
    %26 = tpu.matmul %23, %25, %cst_29 {dimension_numbers = #tpu.dot_dimension_numbers<[1], [0], [0], [1], [0, 0, 1, 1], [], []>} : vector<36x128xbf16>, vector<128x128xbf16>, vector<36x128xf32> -> vector<36x128xf32>
    %27 = arith.addf %22, %26 : vector<36x128xf32>
    %c0_30 = arith.constant 0 : index
    %c0_31 = arith.constant 0 : index
    %28 = vector.load %arg4[%c0_30, %c0_31] : memref<1x128xf32, #tpu.memory_space<vmem>>, vector<1x128xf32>
    %29 = vector.broadcast %28 : vector<1x128xf32> to vector<36x128xf32>
    %30 = arith.addf %27, %29 : vector<36x128xf32>
    %cst_32 = arith.constant 0.000000e+00 : f32
    %31 = vector.broadcast %cst_32 : f32 to vector<36x128xf32>
    %32 = arith.maximumf %30, %31 : vector<36x128xf32>
    %33 = arith.truncf %32 : vector<36x128xf32> to vector<36x128xbf16>
    %c1_33 = arith.constant 1 : index
    %c0_34 = arith.constant 0 : index
    %34 = vector.load %arg8[%c1_33, %c0_34] : memref<38x128xbf16, #tpu.memory_space<vmem>>, vector<36x128xbf16>
    tpu.vector_store %arg8[%c1_33, %c0_34], %33 {strides = array<i32>} : memref<38x128xbf16, #tpu.memory_space<vmem>>, vector<36x128xbf16>,
    %cst_35 = arith.constant 0.000000e+00 : bf16
    %35 = vector.broadcast %cst_35 : bf16 to vector<2x128xbf16>
    %c0_36 = arith.constant 0 : index
    %c0_37 = arith.constant 0 : index
    %36 = vector.load %arg8[%c0_36, %c0_37] : memref<38x128xbf16, #tpu.memory_space<vmem>>, vector<2x128xbf16>
    tpu.vector_store %arg8[%c0_36, %c0_37], %35 {strides = array<i32>} : memref<38x128xbf16, #tpu.memory_space<vmem>>, vector<2x128xbf16>,
    %cst_38 = arith.constant 0.000000e+00 : bf16
    %37 = vector.broadcast %cst_38 : bf16 to vector<2x128xbf16>
    %c18_39 = arith.constant 18 : index
    %c0_40 = arith.constant 0 : index
    %38 = vector.load %arg8[%c18_39, %c0_40] : memref<38x128xbf16, #tpu.memory_space<vmem>>, vector<2x128xbf16>
    tpu.vector_store %arg8[%c18_39, %c0_40], %37 {strides = array<i32>} : memref<38x128xbf16, #tpu.memory_space<vmem>>, vector<2x128xbf16>,
    %cst_41 = arith.constant 0.000000e+00 : bf16
    %39 = vector.broadcast %cst_41 : bf16 to vector<2x128xbf16>
    %c36_42 = arith.constant 36 : index
    %c0_43 = arith.constant 0 : index
    %40 = vector.load %arg8[%c36_42, %c0_43] : memref<38x128xbf16, #tpu.memory_space<vmem>>, vector<2x128xbf16>
    tpu.vector_store %arg8[%c36_42, %c0_43], %39 {strides = array<i32>} : memref<38x128xbf16, #tpu.memory_space<vmem>>, vector<2x128xbf16>,
    %c0_44 = arith.constant 0 : index
    %c0_45 = arith.constant 0 : index
    %41 = vector.load %arg8[%c0_44, %c0_45] : memref<38x128xbf16, #tpu.memory_space<vmem>>, vector<36x128xbf16>
    %c0_46 = arith.constant 0 : index
    %c0_47 = arith.constant 0 : index
    %c0_48 = arith.constant 0 : index
    %42 = vector.load %arg3[%c0_46, %c0_47, %c0_48] : memref<3x128x128xbf16, #tpu.memory_space<vmem>>, vector<1x128x128xbf16>
    %43 = vector.shape_cast %42 : vector<1x128x128xbf16> to vector<128x128xbf16>
    %cst_49 = arith.constant dense<0.000000e+00> : vector<36x128xf32>
    %44 = tpu.matmul %41, %43, %cst_49 {dimension_numbers = #tpu.dot_dimension_numbers<[1], [0], [0], [1], [0, 0, 1, 1], [], []>} : vector<36x128xbf16>, vector<128x128xbf16>, vector<36x128xf32> -> vector<36x128xf32>
    %c1_50 = arith.constant 1 : index
    %c0_51 = arith.constant 0 : index
    %45 = vector.load %arg8[%c1_50, %c0_51] : memref<38x128xbf16, #tpu.memory_space<vmem>>, vector<36x128xbf16>
    %c1_52 = arith.constant 1 : index
    %c0_53 = arith.constant 0 : index
    %c0_54 = arith.constant 0 : index
    %46 = vector.load %arg3[%c1_52, %c0_53, %c0_54] : memref<3x128x128xbf16, #tpu.memory_space<vmem>>, vector<1x128x128xbf16>
    %47 = vector.shape_cast %46 : vector<1x128x128xbf16> to vector<128x128xbf16>
    %cst_55 = arith.constant dense<0.000000e+00> : vector<36x128xf32>
    %48 = tpu.matmul %45, %47, %cst_55 {dimension_numbers = #tpu.dot_dimension_numbers<[1], [0], [0], [1], [0, 0, 1, 1], [], []>} : vector<36x128xbf16>, vector<128x128xbf16>, vector<36x128xf32> -> vector<36x128xf32>
    %49 = arith.addf %44, %48 : vector<36x128xf32>
    %c2_56 = arith.constant 2 : index
    %c0_57 = arith.constant 0 : index
    %50 = vector.load %arg8[%c2_56, %c0_57] : memref<38x128xbf16, #tpu.memory_space<vmem>>, vector<36x128xbf16>
    %c2_58 = arith.constant 2 : index
    %c0_59 = arith.constant 0 : index
    %c0_60 = arith.constant 0 : index
    %51 = vector.load %arg3[%c2_58, %c0_59, %c0_60] : memref<3x128x128xbf16, #tpu.memory_space<vmem>>, vector<1x128x128xbf16>
    %52 = vector.shape_cast %51 : vector<1x128x128xbf16> to vector<128x128xbf16>
    %cst_61 = arith.constant dense<0.000000e+00> : vector<36x128xf32>
    %53 = tpu.matmul %50, %52, %cst_61 {dimension_numbers = #tpu.dot_dimension_numbers<[1], [0], [0], [1], [0, 0, 1, 1], [], []>} : vector<36x128xbf16>, vector<128x128xbf16>, vector<36x128xf32> -> vector<36x128xf32>
    %54 = arith.addf %49, %53 : vector<36x128xf32>
    %c0_62 = arith.constant 0 : index
    %c0_63 = arith.constant 0 : index
    %55 = vector.load %arg5[%c0_62, %c0_63] : memref<1x128xf32, #tpu.memory_space<vmem>>, vector<1x128xf32>
    %56 = vector.extract_strided_slice %54 {offsets = [1, 0], sizes = [16, 128], strides = [1, 1]} : vector<36x128xf32> to vector<16x128xf32>
    %57 = vector.broadcast %55 : vector<1x128xf32> to vector<16x128xf32>
    %58 = arith.addf %56, %57 : vector<16x128xf32>
    %c0_64 = arith.constant 0 : index
    %c0_65 = arith.constant 0 : index
    %c0_66 = arith.constant 0 : index
    %59 = vector.load %arg1[%c0_64, %c0_65, %c0_66] : memref<2x16x128xf32, #tpu.memory_space<vmem>>, vector<1x16x128xf32>
    %60 = vector.shape_cast %59 : vector<1x16x128xf32> to vector<16x128xf32>
    %61 = arith.addf %58, %60 : vector<16x128xf32>
    %cst_67 = arith.constant 0.000000e+00 : f32
    %62 = vector.broadcast %cst_67 : f32 to vector<16x128xf32>
    %63 = arith.maximumf %61, %62 : vector<16x128xf32>
    %c0_68 = arith.constant 0 : index
    %c0_69 = arith.constant 0 : index
    %c0_70 = arith.constant 0 : index
    %64 = vector.load %arg6[%c0_68, %c0_69, %c0_70] : memref<2x16x128xf32, #tpu.memory_space<vmem>>, vector<1x16x128xf32>
    %65 = vector.shape_cast %64 : vector<1x16x128xf32> to vector<16x128xf32>
    %66 = vector.shape_cast %63 : vector<16x128xf32> to vector<1x16x128xf32>
    tpu.vector_store %arg6[%c0_68, %c0_69, %c0_70], %66 {strides = array<i32>} : memref<2x16x128xf32, #tpu.memory_space<vmem>>, vector<1x16x128xf32>,
    %67 = vector.extract_strided_slice %54 {offsets = [19, 0], sizes = [16, 128], strides = [1, 1]} : vector<36x128xf32> to vector<16x128xf32>
    %68 = vector.broadcast %55 : vector<1x128xf32> to vector<16x128xf32>
    %69 = arith.addf %67, %68 : vector<16x128xf32>
    %c1_71 = arith.constant 1 : index
    %c0_72 = arith.constant 0 : index
    %c0_73 = arith.constant 0 : index
    %70 = vector.load %arg1[%c1_71, %c0_72, %c0_73] : memref<2x16x128xf32, #tpu.memory_space<vmem>>, vector<1x16x128xf32>
    %71 = vector.shape_cast %70 : vector<1x16x128xf32> to vector<16x128xf32>
    %72 = arith.addf %69, %71 : vector<16x128xf32>
    %cst_74 = arith.constant 0.000000e+00 : f32
    %73 = vector.broadcast %cst_74 : f32 to vector<16x128xf32>
    %74 = arith.maximumf %72, %73 : vector<16x128xf32>
    %c1_75 = arith.constant 1 : index
    %c0_76 = arith.constant 0 : index
    %c0_77 = arith.constant 0 : index
    %75 = vector.load %arg6[%c1_75, %c0_76, %c0_77] : memref<2x16x128xf32, #tpu.memory_space<vmem>>, vector<1x16x128xf32>
    %76 = vector.shape_cast %75 : vector<1x16x128xf32> to vector<16x128xf32>
    %77 = vector.shape_cast %74 : vector<16x128xf32> to vector<1x16x128xf32>
    tpu.vector_store %arg6[%c1_75, %c0_76, %c0_77], %77 {strides = array<i32>} : memref<2x16x128xf32, #tpu.memory_space<vmem>>, vector<1x16x128xf32>,
    return
  }
  func.func @transform_0(%arg0: i32) -> (i32, i32, i32) {
    %c0_i32 = arith.constant 0 : i32
    %c0_i32_0 = arith.constant 0 : i32
    %c0_i32_1 = arith.constant 0 : i32
    return %arg0, %c0_i32, %c0_i32_0 : i32, i32, i32
  }
  func.func @transform_1(%arg0: i32) -> (i32, i32, i32) {
    %c0_i32 = arith.constant 0 : i32
    %c0_i32_0 = arith.constant 0 : i32
    %c0_i32_1 = arith.constant 0 : i32
    %c0_i32_2 = arith.constant 0 : i32
    return %c0_i32, %c0_i32_0, %c0_i32_1 : i32, i32, i32
  }
  func.func @transform_2(%arg0: i32) -> (i32, i32, i32) {
    %c0_i32 = arith.constant 0 : i32
    %c0_i32_0 = arith.constant 0 : i32
    %c0_i32_1 = arith.constant 0 : i32
    %c0_i32_2 = arith.constant 0 : i32
    return %c0_i32, %c0_i32_0, %c0_i32_1 : i32, i32, i32
  }
  func.func @transform_3(%arg0: i32) -> (i32, i32) {
    %c0_i32 = arith.constant 0 : i32
    %c0_i32_0 = arith.constant 0 : i32
    %c0_i32_1 = arith.constant 0 : i32
    return %c0_i32, %c0_i32_0 : i32, i32
  }
  func.func @transform_4(%arg0: i32) -> (i32, i32) {
    %c0_i32 = arith.constant 0 : i32
    %c0_i32_0 = arith.constant 0 : i32
    %c0_i32_1 = arith.constant 0 : i32
    return %c0_i32, %c0_i32_0 : i32, i32
  }
  func.func @transform_5(%arg0: i32) -> (i32, i32, i32) {
    %c0_i32 = arith.constant 0 : i32
    %c0_i32_0 = arith.constant 0 : i32
    %c0_i32_1 = arith.constant 0 : i32
    return %arg0, %c0_i32, %c0_i32_0 : i32, i32, i32
  }
}

</mosaic_0001>

<bundles_post_ra>
// kernel: tpu_custom_call.1
= control target key start
LH: loop header
LB: loop body
LE: loop exit
PB: predicated region body
PF: predicated region fallthrough
CT: control target
= control target key end

     0   :  { %10 = vsyncpa [#allocation5], 0  ;;  %s2542_s0 = inlined_call_operand.hbm [shape: f32[4,16,128], index: 0, kind: input, shape index: {}]   ;;  %s2543_s1 = inlined_call_operand.hbm [shape: bf16[3,128,128], index: 1, kind: input, shape index: {}]   ;;  %s2544_s2 = inlined_call_operand.hbm [shape: bf16[3,128,128], index: 2, kind: input, shape index: {}]   ;;  %s2545_s3 = inlined_call_operand.vmem [shape: f32[1,128], index: 3, kind: input, shape index: {}]   ;;  %s2546_s4 = inlined_call_operand.vmem [shape: f32[1,128], index: 4, kind: input, shape index: {}]   ;;  %s2547_s5 = inlined_call_operand.hbm [shape: f32[4,16,128], index: 5, kind: output, shape index: {}]  }
   0x1   :  { %12 = vsyncpa [#allocation5 + $0x1], 0 }
   0x2   :  { %13 = vsyncpa [#allocation8], 0 }
   0x3   :  { %14 = vsyncpa [#allocation6], 0 }
   0x4   :  { %16 = vsyncpa [#allocation6 + $0x1], 0  ;;  %s2126_s18 = smov 0   ;;  %s2128_s19 = smov 0  }
   0x5   :  { %s2130_s20 = smov 0   ;;  %s2132_s21 = smov 0  }
   0x6 LB: > { %s2147_s22 = sadd.s32 4294967295, %s2081_s21   ;;  %s1448_s23 = sadd.s32 4294967294, %s2081_s21   ;;  %s2081_s21 = sphi %s2132_s21, %s2571_s21   ;;  %s2077_s20 = sphi %s2130_s20, %s2570_s20   ;;  %s2073_s19 = sphi %s2128_s19, %s2569_s19   ;;  %s2069_s18 = sphi %s2126_s18, %s2568_s18  }
   0x7   : > { %p42_p0 = scmp.ne.s32.totalorder %s2073_s19, %s2069_s18  ;;  %p2548_p1 = scmp.eq.s32.totalorder %s2147_s22, 0 }
   0x8   : > { %p156_p3 = scmp.eq.s32.totalorder %s1448_s23, 1  ;;  %p1449_p5 = scmp.ge.s32.totalorder %s2081_s21, 1 }
   0x9   : > { %p2156_p4 = por %p2548_p1, %p42_p0  ;;  %p163_p7 = scmp.lt.s32.totalorder %s2081_s21, 3 }
   0xa   : > { %p2161_p6 = por %p156_p3, %p42_p0  ;;  %s2083_s27 = smov [#allocation7]  }
   0xb   : > { %s2551_s24 = scalar_select %p2156_p4, 1, 0 }
   0xc   : > { %s2552_s25 = scalar_select %p2161_p6, 1, 0 }
   0xd   : > { %p2166_p8 = pnand %p1449_p5, %p163_p7  ;;  %s175_s28 = sshll.u32 %s2083_s27, 4  ;;  %s2170_s28 = int_to_ptr.vmem [resolvable:$true] %s175_s28 }
   0xe   : > { %s2084_s30 = smov [#allocation9]   ;;  %s1925_s9 = scalar_lea.hbm %s2543_s1, 3072 }
   0xf   : > { %p1803_p9 = pneg %p2166_p8  ;;  %s188_s6 = sshll.u32 %s2084_s30, 4  ;;  %s2181_s6 = int_to_ptr.vmem [resolvable:$true] %s188_s6 }
  0x10   : > { %p1926_p12 = scmp.ne.s32.totalorder %s2543_s1, %s1925_s9  ;;  %p1932_p5 = scmp.lt.u32.totalorder %s1925_s9, %s2543_s1 }
  0x11   : > { %p2177_p11 = pnand %p1803_p9, %p2548_p1 }
  0x13   : > { %p1927_p13 = pneg %p2177_p11 }
  0x15   : > { %p1928_p0 = pnand %p1927_p13, %p1926_p12 }
  0x17   : > { %p1929_p3 = pneg %p1928_p0 }
  0x19   : > { %p1934_p7 = pnand %p1932_p5, %p1929_p3 }
  0x1b   : > { %1937 = shalt.err (!%p1934_p7)
}
  0x1c   : > { %s1938_s14 = scalar_lea.vmem %s2170_s28, 3072  ;;  %p1946_p2 = scmp.lt.s32.totalorder %s2170_s28, %s2170_s28 }
  0x1d   : > { %p1939_p9 = scmp.ne.s32.totalorder %s2170_s28, %s1938_s14  ;;  %p1947_p12 = scmp.lt.s32.totalorder %s1938_s14, %s1938_s14 }
  0x1f   : > { %p1941_p10 = pnand %p1939_p9, %p1927_p13  ;;  %p1948_p0 = por %p1947_p12, %p1946_p2 }
  0x21   : > { %p1942_p1 = pneg %p1941_p10 }
  0x23   : > { %p1949_p6 = pnand %p1948_p0, %p1942_p1 }
  0x25   : > { %1952 = shalt.err (!%p1949_p6)
}
  0x26   : > { %s2085_s15 = smov 64   ;;  %s2086_s16 = smov 4  }
  0x27   : > { %1806 = dma.hbm_to_vmem [thread:$0]  (!%p2177_p11), %s2543_s1, 3072, %s2170_s28, [#allocation8], %s2085_s15, %s2085_s15, %s2086_s16  }
  0x28   : > { %s1953_s7 = scalar_lea.hbm %s2544_s2, 3072 }
  0x29   : > { %p1954_p2 = scmp.ne.s32.totalorder %s2544_s2, %s1953_s7  ;;  %p1960_p10 = scmp.lt.u32.totalorder %s1953_s7, %s2544_s2 }
  0x2b   : > { %p1956_p1 = pnand %p1954_p2, %p1927_p13 }
  0x2d   : > { %p1957_p6 = pneg %p1956_p1 }
  0x2f   : > { %p1962_p3 = pnand %p1960_p10, %p1957_p6 }
  0x31   : > { %1965 = shalt.err (!%p1962_p3)
}
  0x32   : > { %s1966_s28 = scalar_lea.vmem %s2181_s6, 3072  ;;  %p1974_p12 = scmp.lt.s32.totalorder %s2181_s6, %s2181_s6 }
  0x33   : > { %p1967_p5 = scmp.ne.s32.totalorder %s2181_s6, %s1966_s28  ;;  %p1975_p0 = scmp.lt.s32.totalorder %s1966_s28, %s1966_s28 }
  0x35   : > { %p1969_p7 = pnand %p1967_p5, %p1927_p13  ;;  %p1976_p2 = por %p1975_p0, %p1974_p12 }
  0x37   : > { %p1970_p9 = pneg %p1969_p7 }
  0x39   : > { %p1977_p1 = pnand %p1976_p2, %p1970_p9 }
  0x3b   : > { %1980 = shalt.err (!%p1977_p1)
}
  0x3c   : > { %1809 = dma.hbm_to_vmem [thread:$0]  (!%p2177_p11), %s2544_s2, 3072, %s2181_s6, [#allocation8], %s2085_s15, %s2085_s15, %s2086_s16  }
  0x3d   : > { %s2236_s14 = sadd.s32 1, %s2081_s21   ;;  %s29_s29 = sadd.s32 1, %s2077_s20 }
  0x3e   : > { %s26_s17 = ssub.s32 %s2081_s21, %s2236_s14  ;;  %p36_p13 = scmp.ne.s32.totalorder %s2077_s20, %s2073_s19 }
  0x3f   : > { %p27_p6 = scmp.eq.s32.totalorder %s26_s17, 0  ;;  %p37_p10 = scmp.eq.s32.totalorder %s2081_s21, 0 }
  0x40   : > { %p2555_p3 = scmp.eq.s32.totalorder %s2147_s22, 1  ;;  %p1820_p7 = scmp.lt.s32.totalorder %s2081_s21, 2 }
  0x41   : > { %s2252_s27 = scalar_select %p27_p6, %s2077_s20, %s29_s29  }
  0x42   : > { %p2246_p5 = por %p2555_p3, %p36_p13  ;;  %p38_p9 = por %p37_p10, %p36_p13 }
  0x43   : > { %s208_s30 = sand.u32 1, %s2077_s20   ;;  %s1545_s6 = sshll.u32 %s2081_s21, 9 }
  0x44   : > { %s2556_s23 = scalar_select %p2246_p5, 1, 0 }
  0x45   : > { %s1453_s7 = sshll.u32 %s208_s30, 5  ;;  %s2259_s8 = scalar_lea.hbm %s2542_s0, %s1545_s6 }
  0x46   : > { %s212_s9 = scalar_lea.vmem [#allocation4], %s1453_s7  ;;  %p2263_p11 = pnand %p1820_p7, %p38_p9 }
  0x47   : > { %s220_s10 = sshll.u32 %s212_s9, 4  ;;  %s2267_s28 = scalar_lea.sflag [#allocation5], %s208_s30  ;;  %s2261_s10 = int_to_ptr.vmem [resolvable:$true] %s220_s10 }
  0x48   : > { %s1981_s12 = scalar_lea.hbm %s2259_s8, 512  ;;  %p1983_p0 = pneg %p2263_p11 }
  0x49   : > { %p1982_p12 = scmp.ne.s32.totalorder %s2259_s8, %s1981_s12  ;;  %s1986_s17 = scalar_lea.hbm %s2542_s0, 1024 }
  0x4a   : > { %p1987_p13 = scmp.lt.u32.totalorder %s2259_s8, %s2542_s0  ;;  %p1988_p6 = scmp.lt.u32.totalorder %s1986_s17, %s1981_s12 }
  0x4b   : > { %p1984_p2 = pnand %p1983_p0, %p1982_p12  ;;  %p1990_p3 = scmp.lt.u32.totalorder %s1981_s12, %s2259_s8 }
  0x4c   : > { %p1989_p10 = por %p1988_p6, %p1987_p13 }
  0x4d   : > { %p1985_p1 = pneg %p1984_p2 }
  0x4e   : > { %p1991_p7 = por %p1990_p3, %p1989_p10 }
  0x50   : > { %p1992_p9 = pnand %p1991_p7, %p1985_p1 }
  0x52   : > { %1995 = shalt.err (!%p1992_p9)
}
  0x53   : > { %s1996_s30 = scalar_lea.vmem %s2261_s10, 512  ;;  %s2087_s15 = smov [#allocation4]  }
  0x54   : > { %p1997_p12 = scmp.ne.s32.totalorder %s2261_s10, %s1996_s30  ;;  %s2001_s16 = sshll.u32 %s2087_s15, 4  ;;  %s2002_s16 = int_to_ptr.vmem [resolvable:$false] %s2001_s16 }
  0x55   : > { %s2003_s9 = scalar_lea.vmem %s2002_s16, 1024  ;;  %p2004_p4 = scmp.lt.s32.totalorder %s2261_s10, %s2002_s16 }
  0x56   : > { %p1999_p2 = pnand %p1997_p12, %p1983_p0  ;;  %p2005_p13 = scmp.lt.s32.totalorder %s2003_s9, %s1996_s30 }
  0x58   : > { %p2000_p5 = pneg %p1999_p2  ;;  %p2006_p6 = por %p2005_p13, %p2004_p4 }
  0x5a   : > { %p2007_p10 = pnand %p2006_p6, %p2000_p5 }
  0x5c   : > { %2010 = shalt.err (!%p2007_p10)
}
  0x5d   : > { %s2088_s12 = smov 128   ;;  %s2089_s13 = smov 8  }
  0x5e   : > { %1813 = dma.hbm_to_vmem [thread:$0]  (!%p2263_p11), %s2259_s8, 512, %s2261_s10, %s2267_s28, %s2088_s12, %s2088_s12, %s2089_s13  }
  0x5f   : > { %232 = sbr.rel (%p2166_p8) target bundleno = 705 (0x2c1), region = 40  ;;  %s2298_s29 = sand.u32 (!%p2166_p8), 1, %s2073_s19  }
  0x60   : > { %s1458_s17 = sshll.u32 (!%p2166_p8), %s2298_s29, 5  ;;  %s235_s7 = scalar_lea.sflag (!%p2166_p8), [#allocation5], %s2298_s29 }
  0x61   : > { %s2304_s6 = scalar_lea.vmem (!%p2166_p8), [#allocation4], %s1458_s17  ;;  %p2558_p4 = scmp.ne.s32.totalorder (!%p2166_p8), %s2551_s24, 0 }
  0x66   : > { %2056 = dma.done.wait (%p2558_p4), %s235_s7, 512  }
  0x67   : > { %2058 = vsyncadd (%p2558_p4), %s235_s7, 4294966784  ;;  %p2559_p5 = scmp.eq.s32.totalorder %s2147_s22, 0 }
  0x69   : > { %2060 = dma.done.wait (%p2559_p5), [#allocation8], 6144   ;;  %p2560_p8 = pmov %p2559_p5 }
  0x6a   : > { %v2090_v0 = vmov 0.0   ;;  %v2091_v1 = vmov 0   ;;  %vm2092_vm0 = vmmov 0   ;;  %v1867_v2 = vld [vmem:[#allocation7 + $0x40] sm:$0xff]   ;;  %v1869_v4 = vld [vmem:[#allocation7 + $0x48] sm:$0xff]   ;;  %v1871_v6 = vld [vmem:[#allocation7 + $0x50] sm:$0xff]  }
  0x6b   : > { %2062 = vsyncadd (%p2560_p8), [#allocation8], 4294961152  ;;  %1623 = vmatprep.subr.bf16.mxu0 %v2090_v0  ;;  %1651 = vmatprep.subr.bf16.mxu1 %v2090_v0  ;;  %276 = vst [vmem:[#allocation2] sm:$0x1] %v2091_v1  ;;  %v1868_v3 = vld [vmem:[#allocation7] sm:$0xff]   ;;  %v1870_v5 = vld [vmem:[#allocation7 + $0x8] sm:$0xff]  }
  0x6c   : > { %277 = vst [vmem:[#allocation2 + $0x8] sm:$0x2] %v2091_v1  ;;  %1639 = vmatprep.mubr.msk.bf16.mxu0 %vm2092_vm0, %v2090_v0  ;;  %1667 = vmatprep.mubr.msk.bf16.mxu1 %vm2092_vm0, %v2090_v0  ;;  %v1872_v7 = vld [vmem:[#allocation7 + $0x10] sm:$0xff]   ;;  %v1873_v8 = vld [vmem:[#allocation7 + $0x58] sm:$0xff]   ;;  %v1875_v10 = vld [vmem:[#allocation7 + $0x60] sm:$0xff]   ;;  %vm287_vm1 = vcmask 1040384  }
  0x6d   : > { %1624 = vmatpush3.bf16.msra.mxu0 %v1867_v2  ;;  %1652 = vmatpush3.bf16.msra.mxu1 %v1868_v3  ;;  %v1874_v9 = vld [vmem:[#allocation7 + $0x18] sm:$0xff]   ;;  %v1876_v11 = vld [vmem:[#allocation7 + $0x20] sm:$0xff]   ;;  %v2334_v13 = vld [vmem:[%s2304_s6 + $0x8] sm:$0xff]  ;;  %vm288_vm2 = vcmask 1044484   ;;  %vm310_vm3 = vcmask 1041408   ;;  %vm311_vm4 = vcmask 1045508  }
  0x6e   : > { %1625 = vmatprep.subr.bf16.mxu0 %v2090_v0  ;;  %1653 = vmatprep.subr.bf16.mxu1 %v2090_v0  ;;  %v2331_v12 = vld [vmem:[%s2304_s6] sm:$0xff]  ;;  %v2337_v14 = vld [vmem:[%s2304_s6 + $0x10] sm:$0xff]  ;;  %v1547_v16 = vpack.c.bf16 %v2334_v13, %v2334_v13  ;;  %v2344_v17 = vld [vmem:[%s2304_s6 + $0x18] sm:$0xff]  ;;  %vm376_vm7 = vsmask.f32 7424  ;;  %vm638_vm8 = vcmask 1046528  }
  0x6f   : > { %v1546_v15 = vpack.c.bf16 %v2331_v12, %v2331_v12  ;;  %v1548_v18 = vpack.c.bf16 %v2337_v14, %v2337_v14  ;;  %v1877_v19 = vld [vmem:[#allocation7 + $0x68] sm:$0xff]   ;;  %v1549_v20 = vpack.c.bf16 %v2344_v17, %v2344_v17  ;;  %vm2352_vm5 = vmor %vm287_vm1, %vm288_vm2  ;;  %v1879_v30 = vld [vmem:[#allocation7 + $0x70] sm:$0xff]   ;;  %vm840_vm9 = vcmask 1043456   ;;  %s2482_s11 = scalar_lea.vmem [#allocation10], %s1458_s17  ;;  %s1556_s30 = sshll.u32 %s2147_s22, 9 }
  0x70   : > { %v1878_v21 = vld [vmem:[#allocation7 + $0x28] sm:$0xff]   ;;  %v292_v24 = vrot.slane %v1547_v16, 7  ;;  %vm312_vm6 = vmor %vm310_vm3, %vm311_vm4  ;;  %v1880_v32 = vld [vmem:[#allocation7 + $0x30] sm:$0xff]   ;;  %vm841_vm10 = vsmask.f32 7938  ;;  %vm849_vm15 = vcmask 1042432   ;;  %s2497_s9 = scalar_lea.hbm %s2547_s5, %s1556_s30 }
  0x71   : > { %1626 = vmatpush3.bf16.msra.mxu0 %v1869_v4  ;;  %1654 = vmatpush3.bf16.msra.mxu1 %v1870_v5  ;;  %v290_v23 = vrot.slane %v1546_v15, 7  ;;  %v313_v25 = vrot.slane %v1548_v18, 6  ;;  %v315_v26 = vrot.slane %v1549_v20, 6  ;;  %v1881_v35 = vld [vmem:[#allocation7 + $0x78] sm:$0xff]   ;;  %v1885_v49 = vld [vmem:[#allocation7 + $0x80] sm:$0xff]   ;;  %v1886_v53 = vld [vmem:[#allocation7 + $0x88] sm:$0xff]  }
  0x72   : > { %1627 = vmatprep.subr.bf16.mxu0 %v2090_v0  ;;  %1655 = vmatprep.subr.bf16.mxu1 %v2090_v0  ;;  %v294_v28 = vrot.slane %v292_v24, 4  ;;  %v1882_v36 = vld [vmem:[#allocation7 + $0x38] sm:$0xff]   ;;  %v1887_v55 = vld [vmem:[#allocation7 + $0x90] sm:$0xff]   ;;  %v1890_v61 = vld [vmem:[#allocation7 + $0xa0] sm:$0xff]   ;;  %vm789_vm11 = vsmask.f32 256 }
  0x73   : > { %v291_v27 = vrot.slane %v290_v23, 4  ;;  %298 = vst [vmem:[#allocation2] sm:$0xe] %v290_v23  ;;  %v314_v29 = vrot.slane %v313_v25, 4  ;;  %321 = vst [vmem:[#allocation2 + $0x8] sm:$0xc] %v313_v25 }
  0x74   : > { %v317_v31 = vrot.slane %v315_v26, 4  ;;  %300 = vst [vmem:[#allocation2 + $0x8] sm:$0x1] %v294_v28  ;;  %v1889_v59 = vld [vmem:[#allocation7 + $0x98] sm:$0xff]   ;;  %v1891_v62 = vld [vmem:[#allocation7 + $0xa8] sm:$0xff]   ;;  %v1893_v2 = vld [vmem:[#allocation7 + $0xb0] sm:$0xff]  }
  0x75   : > { %1628 = vmatpush3.bf16.msra.mxu0 %v1871_v6  ;;  %1656 = vmatpush3.bf16.msra.mxu1 %v1872_v7  ;;  %v293_v33 = vsel %vm2352_vm5, %v291_v27, %v292_v24  ;;  %v316_v34 = vsel %vm312_vm6, %v314_v29, %v315_v26  ;;  %v1894_v4 = vld [vmem:[#allocation7 + $0xb8] sm:$0xff]   ;;  %v1898_v15 = vld [vmem:[#allocation9 + $0x10] sm:$0xff]   ;;  %v1899_v16 = vld [vmem:[#allocation9 + $0x40] sm:$0xff]   ;;  %vm790_vm12 = vsmask.f32 4368  ;;  %s1356_s28 = sshll.u32 %s2482_s11, 4  ;;  %s2492_s28 = int_to_ptr.vmem [resolvable:$true] %s1356_s28 }
  0x76   : > { %1629 = vmatprep.subr.bf16.mxu0 %v2090_v0  ;;  %1657 = vmatprep.subr.bf16.mxu1 %v2090_v0  ;;  %299 = vst [vmem:[#allocation2 + $0x4] sm:$0xf] %v293_v33  ;;  %322 = vst [vmem:[#allocation2 + $0xc] sm:$0xf] %v316_v34  ;;  %v1900_v18 = vld [vmem:[#allocation9 + $0x18] sm:$0xff]   ;;  %v1902_v20 = vld [vmem:[#allocation9 + $0x20] sm:$0xff]  }
  0x77   : > { %323 = vst [vmem:[#allocation2 + $0x10] sm:$0x3] %v317_v31  ;;  %v1904_v22 = vld [vmem:[#allocation9 + $0x28] sm:$0xff]   ;;  %v1905_v23 = vld [vmem:[#allocation9 + $0x58] sm:$0xff]   ;;  %v1906_v24 = vld [vmem:[#allocation9 + $0x30] sm:$0xff]   ;;  %s1342_s12 = scalar_lea.sflag [#allocation6], %s2298_s29 }
  0x78   : > { %v1907_v25 = vld [vmem:[#allocation9 + $0x60] sm:$0xff]   ;;  %v1908_v26 = vld [vmem:[#allocation9 + $0x38] sm:$0xff]   ;;  %v1910_v27 = vld [vmem:[#allocation9 + $0x68] sm:$0xff]   ;;  %vm850_vm2 = vsmask.f32 2304  ;;  %s2011_s13 = scalar_lea.vmem %s2492_s28, 512 }
  0x79   : > { %1630 = vmatpush3.bf16.msra.mxu0 %v1873_v8  ;;  %1658 = vmatpush3.bf16.msra.mxu1 %v1874_v9  ;;  %v1911_v28 = vld [vmem:[#allocation9 + $0x70] sm:$0xff]   ;;  %v1913_v29 = vld [vmem:[#allocation9 + $0x78] sm:$0xff]   ;;  %vm842_vm13 = vmand %vm840_vm9, %vm841_vm10  ;;  %p2012_p11 = scmp.ne.s32.totalorder %s2492_s28, %s2011_s13  ;;  %p2565_p0 = scmp.ne.s32.totalorder %s2556_s23, 0 }
  0x7a   : > { %1631 = vmatprep.subr.bf16.mxu0 %v2090_v0  ;;  %1659 = vmatprep.subr.bf16.mxu1 %v2090_v0  ;;  %v324_v37 = vld [vmem:[#allocation2] sm:$0xf]  ;;  %vm2427_vm14 = vmor %vm789_vm11, %vm790_vm12  ;;  %s2093_s22 = smov [#allocation10]  }
  0x7b   : > { %v617_v63 = vld [vmem:[#allocation2] sm:$0xe]  ;;  %vm851_vm3 = vmand %vm849_vm15, %vm850_vm2  ;;  %p2013_p1 = pnand %p2012_p11, %p2565_p0  ;;  %s2015_s17 = sshll.u32 %s2093_s22, 4  ;;  %s2016_s17 = int_to_ptr.vmem [resolvable:$false] %s2015_s17 }
  0x7c   : > { %s2017_s7 = scalar_lea.vmem %s2016_s17, 1024  ;;  %p2018_p7 = scmp.lt.s32.totalorder %s2492_s28, %s2016_s17 }
  0x7d   : > { %1632 = vmatpush3.bf16.msra.mxu0 %v1875_v10  ;;  %1660 = vmatpush3.bf16.msra.mxu1 %v1876_v11  ;;  %v325_v38 = vld [vmem:[#allocation2 + $0x4] sm:$0xf]  ;;  %v2364_v39 = vld [vmem:[#allocation2 + $0x8] sm:$0xff]   ;;  %v1897_v11 = vld [vmem:[#allocation9 + $0x8] sm:$0xff]   ;;  %p2014_p3 = pneg %p2013_p1  ;;  %p2019_p9 = scmp.lt.s32.totalorder %s2017_s7, %s2011_s13 }
  0x7e   : > { %1633 = vmatprep.subr.bf16.mxu0 %v2090_v0  ;;  %1661 = vmatprep.subr.bf16.mxu1 %v2090_v0  ;;  %v1468_v40 = vcombine.low %v324_v37, %v325_v38  ;;  %v2367_v41 = vld [vmem:[#allocation2 + $0x10] ss:$0 sps:$4 sm:$0x77]   ;;  %v385_v42 = vshll.u32 %v2364_v39, 16  ;;  %v389_v47 = vshrl.u32 %v2364_v39, 16  ;;  %v1488_v3 = vcombine.low %v617_v63, %v325_v38  ;;  %v1896_v10 = vld [vmem:[#allocation9] sm:$0xff]  }
  0x7f   : > { %v393_v45 = vshll.u32 %v2367_v41, 16  ;;  %v1892_v56 = vld [vmem:[#allocation2 + $0x10] ss:$0 sps:$4 sm:$0x33]   ;;  %v397_v58 = vshrl.u32 %v2367_v41, 16  ;;  %v640_v6 = vrot.slane %v2364_v39, 1  ;;  %p2020_p12 = por %p2019_p9, %p2018_p7 }
  0x80   : > { %v378_v43 = vshrl.u32 %v1468_v40, 16  ;;  %v380_v44 = vshll.u32 %v1468_v40, 16  ;;  %v387_v46 = vrot.slane %v385_v42, 1  ;;  %v639_v5 = vrot.slane %v1488_v3, 1 }
  0x81   : > { %1634 = vmatpush3.bf16.msra.mxu0 %v1877_v19  ;;  %1662 = vmatpush3.bf16.msra.mxu1 %v1878_v21  ;;  %v395_v50 = vrot.slane %v393_v45, 1  ;;  %v642_v8 = vrot.slane %v2367_v41, 1  ;;  %v1901_v19 = vld [vmem:[#allocation9 + $0x48] sm:$0xff]   ;;  %v1903_v21 = vld [vmem:[#allocation9 + $0x50] sm:$0xff]   ;;  %p2021_p2 = pnand %p2020_p12, %p2014_p3 }
  0x82   : > { %1635 = vmatprep.subr.bf16.mxu0 %v2090_v0  ;;  %1663 = vmatprep.subr.bf16.mxu1 %v2090_v0  ;;  %v382_v48 = vrot.slane %v380_v44, 1  ;;  %v391_v54 = vor.u32 %v389_v47, %v387_v46  ;;  %v641_v7 = vsel %vm638_vm8, %v639_v5, %v640_v6 }
  0x83   : > { %v399_v60 = vor.u32 %v397_v58, %v395_v50  ;;  %v643_v9 = vsel %vm638_vm8, %v640_v6, %v642_v8 }
  0x84   : > { %v383_v51 = vor.u32 %v382_v48, %v378_v43  ;;  %v396_v57 = vsel %vm376_vm7, %v391_v54, %v395_v50 }
  0x85   : > { %1636 = vmatpush3.bf16.msra.mxu0 %v1879_v30  ;;  %1664 = vmatpush3.bf16.msra.mxu1 %v1880_v32 }
  0x86   : > { %1637 = vmatprep.subr.bf16.mxu0 %v2090_v0  ;;  %1665 = vmatprep.subr.bf16.mxu1 %v2090_v0  ;;  %v388_v52 = vsel %vm376_vm7, %v383_v51, %v387_v46 }
  0x89   : > { %1638 = vmatpush3.bf16.msra.mxu0 %v1881_v35  ;;  %1666 = vmatpush3.bf16.msra.mxu1 %v1882_v36 }
  0x8a   : > { %1679 = vmatprep.subr.bf16.mxu0 %v2090_v0  ;;  %1707 = vmatprep.subr.bf16.mxu1 %v2090_v0 }
  0x8c   : > { %1668 = vmatmul.mubr.bf16.vlgmr.msra.gmra.mrb[0].mxu1 %v1468_v40  ;;  %1640 = vmatmul.mubr.bf16.vlgmr.msra.gmra.mrb[0].mxu0 %v388_v52 }
  0x8d   : > { %1671 = vmatprep.mubr.msk.bf16.mxu1 %vm2092_vm0, %v2090_v0  ;;  %1680 = vmatpush3.bf16.msra.mxu0 %v1885_v49 }
  0x8e   : > { %1643 = vmatprep.mubr.msk.bf16.mxu0 %vm2092_vm0, %v2090_v0  ;;  %1681 = vmatprep.subr.bf16.mxu0 %v2090_v0 }
  0x8f   : > { %1708 = vmatpush3.bf16.msra.mxu1 %v1899_v16 }
  0x90   : > { %1709 = vmatprep.subr.bf16.mxu1 %v2090_v0 }
  0x91   : > { %1682 = vmatpush3.bf16.msra.mxu0 %v1886_v53 }
  0x92   : > { %1683 = vmatprep.subr.bf16.mxu0 %v2090_v0 }
  0x93   : > { %1710 = vmatpush3.bf16.msra.mxu1 %v1901_v19 }
  0x94   : > { %1672 = vmatmul.mubr.bf16.gmra.mrb[4].mxu1 %v2364_v39  ;;  %1644 = vmatmul.mubr.bf16.gmra.mrb[4].mxu0 %v396_v57 }
  0x95   : > { %1675 = vmatprep.mubr.msk.bf16.mxu1 %vm2092_vm0, %v2090_v0  ;;  %1684 = vmatpush3.bf16.msra.mxu0 %v1887_v55 }
  0x96   : > { %1647 = vmatprep.mubr.msk.bf16.mxu0 %vm2092_vm0, %v2090_v0  ;;  %1685 = vmatprep.subr.bf16.mxu0 %v2090_v0 }
  0x97   : > { %1711 = vmatprep.subr.bf16.mxu1 %v2090_v0 }
  0x98   : > { %1712 = vmatpush3.bf16.msra.mxu1 %v1903_v21 }
  0x99   : > { %1686 = vmatpush3.bf16.msra.mxu0 %v1889_v59  ;;  %1713 = vmatprep.subr.bf16.mxu1 %v2090_v0 }
  0x9a   : > { %1687 = vmatprep.subr.bf16.mxu0 %v2090_v0 }
  0x9c   : > { %1676 = vmatmul.mubr.bf16.gmra.mrb[8].mxu1 %v1892_v56  ;;  %1648 = vmatmul.mubr.bf16.gmra.mrb[8].mxu0 %v399_v60  ;;  %v1497_v60 = vld [vmem:[%s2545_s3] ss:$0 sm:$0xff] }
  0x9d   : > { %1723 = vmatprep.mubr.msk.bf16.mxu1 %vm2092_vm0, %v2090_v0  ;;  %1688 = vmatpush3.bf16.msra.mxu0 %v1890_v61 }
  0x9e   : > { %1695 = vmatprep.mubr.msk.bf16.mxu0 %vm2092_vm0, %v2090_v0  ;;  %1689 = vmatprep.subr.bf16.mxu0 %v2090_v0 }
  0x9f   : > { %1714 = vmatpush3.bf16.msra.mxu1 %v1905_v23 }
  0xa0   : > { %1715 = vmatprep.subr.bf16.mxu1 %v2090_v0 }
  0xa1   : > { %1690 = vmatpush3.bf16.msra.mxu0 %v1891_v62 }
  0xa2   : > { %1691 = vmatprep.subr.bf16.mxu0 %v2090_v0 }
  0xa3   : > { %1716 = vmatpush3.bf16.msra.mxu1 %v1907_v25 }
  0xa4   : > { %1717 = vmatprep.subr.bf16.mxu1 %v2090_v0 }
  0xa5   : > { %1692 = vmatpush3.bf16.msra.mxu0 %v1893_v2 }
  0xa6   : > { %1693 = vmatprep.subr.bf16.mxu0 %v2090_v0 }
  0xa7   : > { %1718 = vmatpush3.bf16.msra.mxu1 %v1910_v27 }
  0xa8   : > { %1719 = vmatprep.subr.bf16.mxu1 %v2090_v0 }
  0xa9   : > { %1694 = vmatpush3.bf16.msra.mxu0 %v1894_v4 }
  0xaa   : > { %1735 = vmatprep.subr.bf16.mxu0 %v2090_v0 }
  0xab   : > { %1720 = vmatpush3.bf16.msra.mxu1 %v1911_v28 }
  0xac   : > { %1696 = vmatmul.mubr.bf16.vlgmr.msra.gmra.mrb[12].mxu0 %v641_v7  ;;  %1721 = vmatprep.subr.bf16.mxu1 %v2090_v0 }
  0xad   : > { %1699 = vmatprep.mubr.msk.bf16.mxu0 %vm2092_vm0, %v2090_v0  ;;  %1736 = vmatpush3.bf16.msra.mxu0 %v1896_v10 }
  0xae   : > { %1737 = vmatprep.subr.bf16.mxu0 %v2090_v0 }
  0xaf   : > { %1722 = vmatpush3.bf16.msra.mxu1 %v1913_v29 }
  0xb0   : > { %1763 = vmatprep.subr.bf16.mxu1 %v2090_v0 }
  0xb1   : > { %1738 = vmatpush3.bf16.msra.mxu0 %v1897_v11 }
  0xb2   : > { %1739 = vmatprep.subr.bf16.mxu0 %v2090_v0 }
  0xb4   : > { %1700 = vmatmul.mubr.bf16.gmra.mrb[16].mxu0 %v643_v9 }
  0xb5   : > { %1703 = vmatprep.mubr.msk.bf16.mxu0 %vm2092_vm0, %v2090_v0  ;;  %1740 = vmatpush3.bf16.msra.mxu0 %v1898_v15 }
  0xb6   : > { %1741 = vmatprep.subr.bf16.mxu0 %v2090_v0 }
  0xb9   : > { %1742 = vmatpush3.bf16.msra.mxu0 %v1900_v18 }
  0xba   : > { %1743 = vmatprep.subr.bf16.mxu0 %v2090_v0 }
  0xbc   : > { %1704 = vmatmul.mubr.bf16.gmra.mrb[20].mxu0 %v642_v8 }
  0xbd   : > { %1751 = vmatprep.mubr.msk.bf16.mxu0 %vm2092_vm0, %v2090_v0  ;;  %1744 = vmatpush3.bf16.msra.mxu0 %v1902_v20 }
  0xbe   : > { %1745 = vmatprep.subr.bf16.mxu0 %v2090_v0 }
  0xc1   : > { %1746 = vmatpush3.bf16.msra.mxu0 %v1904_v22 }
  0xc2   : > { %1747 = vmatprep.subr.bf16.mxu0 %v2090_v0 }
  0xc5   : > { %1748 = vmatpush3.bf16.msra.mxu0 %v1906_v24  ;;  %v843_v24 = vld [vmem:[#allocation3] sm:$0xf] }
  0xc6   : > { %1749 = vmatprep.subr.bf16.mxu0 %v2090_v0 }
  0xc9   : > { %1750 = vmatpush3.bf16.msra.mxu0 %v1908_v26 }
 0x15f   : > { %v595_v30 = vpop.f32.mrb[0].mxu1  ;;  %v485_v34 = vpop.f32.mrb[0].mxu0 }
 0x160   : > { %v1669_v31 = vpop.f32.mrb[1].mxu1  ;;  %v596_v35 = vadd.f32 %v595_v30, %v485_v34  ;;  %v1641_v36 = vpop.f32.mrb[1].mxu0 }
 0x161   : > { %v598_v32 = vpop.f32.mrb[2].mxu1  ;;  %v488_v37 = vpop.f32.mrb[2].mxu0 }
 0x162   : > { %v1670_v33 = vpop.f32.mrb[3].mxu1  ;;  %v599_v39 = vadd.f32 %v598_v32, %v488_v37  ;;  %v1642_v40 = vpop.f32.mrb[3].mxu0 }
 0x167   : > { %v603_v38 = vpop.f32.mrb[4].mxu1  ;;  %v493_v44 = vpop.f32.mrb[4].mxu0 }
 0x168   : > { %v1673_v41 = vpop.f32.mrb[5].mxu1  ;;  %v1645_v45 = vpop.f32.mrb[5].mxu0  ;;  %v604_v46 = vadd.f32 %v603_v38, %v493_v44 }
 0x169   : > { %v606_v42 = vpop.f32.mrb[6].mxu1  ;;  %v496_v47 = vpop.f32.mrb[6].mxu0 }
 0x16a   : > { %v1674_v43 = vpop.f32.mrb[7].mxu1  ;;  %v1646_v49 = vpop.f32.mrb[7].mxu0  ;;  %v607_v50 = vadd.f32 %v606_v42, %v496_v47 }
 0x16f   : > { %v611_v48 = vpop.f32.mrb[8].mxu1  ;;  %v501_v54 = vpop.f32.mrb[8].mxu0 }
 0x170   : > { %v1677_v51 = vpop.f32.mrb[9].mxu1  ;;  %v1649_v55 = vpop.f32.mrb[9].mxu0  ;;  %v612_v56 = vadd.f32 %v611_v48, %v501_v54 }
 0x171   : > { %v614_v52 = vpop.f32.mrb[10].mxu1  ;;  %v504_v57 = vpop.f32.mrb[10].mxu0 }
 0x172   : > { %v1678_v53 = vpop.f32.mrb[11].mxu1  ;;  %v1650_v58 = vpop.f32.mrb[11].mxu0 }
 0x17f   : > { %v729_v59 = vpop.f32.mrb[12].mxu0 }
 0x180   : > { %v751_v61 = vadd.f32 %v729_v59, %v596_v35  ;;  %v1697_v62 = vpop.f32.mrb[13].mxu0 }
 0x181   : > { %v732_v63 = vpop.f32.mrb[14].mxu0 }
 0x182   : > { %v763_v2 = vadd.f32 %v1497_v60, %v751_v61  ;;  %v752_v3 = vadd.f32 %v732_v63, %v599_v39  ;;  %v1698_v4 = vpop.f32.mrb[15].mxu0 }
 0x184   : > { %v768_v5 = vmax.f32 %v763_v2, 0.0  ;;  %v764_v6 = vadd.f32 %v1497_v60, %v752_v3 }
 0x186   : > { %v1550_v7 = vpack.c.bf16 %v768_v5, %v768_v5  ;;  %v769_v8 = vmax.f32 %v764_v6, 0.0  ;;  %v852_v5 = vld [vmem:[#allocation3 + $0x10] sm:$0x7] }
 0x187   : > { %v737_v9 = vpop.f32.mrb[16].mxu0 }
 0x188   : > { %v793_v10 = vshrl.u32 %v1550_v7, 16  ;;  %v1551_v11 = vpack.c.bf16 %v769_v8, %v769_v8  ;;  %v753_v15 = vadd.f32 %v737_v9, %v604_v46  ;;  %v1701_v16 = vpop.f32.mrb[17].mxu0  ;;  %v796_v20 = vshll.u32 %v1550_v7, 16 }
 0x189   : > { %v740_v18 = vpop.f32.mrb[18].mxu0 }
 0x18a   : > { %v795_v19 = vrot.slane %v793_v10, 7  ;;  %v801_v21 = vshrl.u32 %v1551_v11, 16  ;;  %v765_v22 = vadd.f32 %v1497_v60, %v753_v15  ;;  %v1702_v23 = vpop.f32.mrb[19].mxu0  ;;  %v754_v25 = vadd.f32 %v740_v18, %v607_v50 }
 0x18b   : > { %v804_v28 = vshll.u32 %v1551_v11, 16  ;;  %v1916_v23 = vld [vmem:[#allocation9 + $0x88] sm:$0xff]  }
 0x18c   : > { %v798_v26 = vor.u32 %v796_v20, %v795_v19  ;;  %v803_v27 = vrot.slane %v801_v21, 7  ;;  %v770_v29 = vmax.f32 %v765_v22, 0.0  ;;  %v766_v31 = vadd.f32 %v1497_v60, %v754_v25 }
 0x18d   : > { %v799_v32 = vrot.slane %v795_v19, 4  ;;  %v1914_v19 = vld [vmem:[#allocation9 + $0x80] sm:$0xff]  }
 0x18e   : > { %v844_v33 = vsel %vm842_vm13, %v798_v26, %v843_v24  ;;  %v806_v34 = vor.u32 %v804_v28, %v803_v27  ;;  %v1552_v35 = vpack.c.bf16 %v770_v29, %v770_v29  ;;  %v771_v36 = vmax.f32 %v766_v31, 0.0  ;;  %v1919_v29 = vld [vmem:[#allocation9 + $0x98] sm:$0xff]   ;;  %v1920_v31 = vld [vmem:[#allocation9 + $0xa0] sm:$0xff]  }
 0x18f   : > { %845 = vst [vmem:[#allocation3] sm:$0xf] %v844_v33  ;;  %v745_v37 = vpop.f32.mrb[20].mxu0  ;;  %v808_v49 = vrot.slane %v803_v27, 4  ;;  %v1918_v27 = vld [vmem:[#allocation9 + $0x90] sm:$0xff]   ;;  %v1921_v33 = vld [vmem:[#allocation9 + $0xa8] sm:$0xff]  }
 0x190   : > { %855 = vst [vmem:[#allocation3] sm:$0x1] %v2091_v1  ;;  %v807_v38 = vsel %vm2427_vm14, %v799_v32, %v806_v34  ;;  %v810_v39 = vshrl.u32 %v1552_v35, 16  ;;  %v755_v40 = vadd.f32 %v745_v37, %v612_v56  ;;  %v1705_v41 = vpop.f32.mrb[21].mxu0  ;;  %v1553_v42 = vpack.c.bf16 %v771_v36, %v771_v36  ;;  %v1922_v34 = vld [vmem:[#allocation9 + $0xb0] sm:$0xff]   ;;  %v1923_v36 = vld [vmem:[#allocation9 + $0xb8] sm:$0xff]  }
 0x191   : > { %846 = vst [vmem:[#allocation3 + $0x4] sm:$0xf] %v807_v38  ;;  %v748_v43 = vpop.f32.mrb[22].mxu0  ;;  %v813_v45 = vshll.u32 %v1552_v35, 16 }
 0x192   : > { %v812_v44 = vrot.slane %v810_v39, 7  ;;  %v767_v46 = vadd.f32 %v1497_v60, %v755_v40  ;;  %v1706_v47 = vpop.f32.mrb[23].mxu0  ;;  %v819_v48 = vshrl.u32 %v1553_v42, 16  ;;  %v822_v53 = vshll.u32 %v1553_v42, 16 }
 0x194   : > { %v815_v50 = vor.u32 %v813_v45, %v812_v44  ;;  %v772_v51 = vmax.f32 %v767_v46, 0.0  ;;  %v821_v52 = vrot.slane %v819_v48, 7  ;;  %v817_v57 = vrot.slane %v812_v44, 4 }
 0x196   : > { %v816_v54 = vsel %vm2427_vm14, %v808_v49, %v815_v50  ;;  %v1554_v55 = vpack.c.bf16 %v772_v51, %v772_v51  ;;  %v824_v56 = vor.u32 %v822_v53, %v821_v52  ;;  %v826_v3 = vrot.slane %v821_v52, 4  ;;  %v1150_v35 = vld [vmem:[#allocation3] sm:$0xe] }
 0x197   : > { %847 = vst [vmem:[#allocation3 + $0x8] sm:$0xf] %v816_v54  ;;  %v858_v58 = vld [vmem:[#allocation3] sm:$0xf] }
 0x198   : > { %856 = vst [vmem:[#allocation3 + $0x8] sm:$0x2] %v2091_v1  ;;  %v828_v59 = vshrl.u32 %v1554_v55, 16  ;;  %v2437_v61 = vld [vmem:[#allocation3 + $0x4] sm:$0xf]  ;;  %v825_v60 = vsel %vm2427_vm14, %v817_v57, %v824_v56  ;;  %v831_v2 = vshll.u32 %v1554_v55, 16 }
 0x199   : > { %v1503_v62 = vcombine.low %v858_v58, %v2437_v61  ;;  %848 = vst [vmem:[#allocation3 + $0xc] sm:$0xf] %v825_v60  ;;  %v1523_v37 = vcombine.low %v1150_v35, %v2437_v61 }
 0x19a   : > { %v830_v63 = vrot.slane %v828_v59, 7 }
 0x19b   : > { %1752 = vmatmul.mubr.bf16.vlgmr.msra.gmra.mrb[24].mxu0 %v1503_v62  ;;  %v913_v6 = vshll.u32 %v1503_v62, 16  ;;  %v911_v11 = vshrl.u32 %v1503_v62, 16  ;;  %v1171_v39 = vrot.slane %v1523_v37, 1 }
 0x19c   : > { %v833_v4 = vor.u32 %v831_v2, %v830_v63  ;;  %1755 = vmatprep.mubr.msk.bf16.mxu0 %vm2092_vm0, %v2090_v0 }
 0x19d   : > { %v915_v10 = vrot.slane %v913_v6, 1 }
 0x19e   : > { %v834_v7 = vsel %vm2427_vm14, %v826_v3, %v833_v4 }
 0x19f   : > { %v853_v8 = vsel %vm851_vm3, %v834_v7, %v852_v5  ;;  %v916_v16 = vor.u32 %v915_v10, %v911_v11  ;;  %v1532_v10 = vld [vmem:[%s2546_s4] ss:$0 sm:$0xff]  ;;  %v1303_v11 = vrot.slane %v2331_v12, 7  ;;  %v1326_v12 = vrot.slane %v2344_v17, 5 }
 0x1a0   : > { %854 = vst [vmem:[#allocation3 + $0x10] sm:$0x7] %v853_v8  ;;  %v1912_v9 = vld [vmem:[#allocation3 + $0x8] sm:$0xff]  }
 0x1a1   : > { %857 = vst [vmem:[#allocation3 + $0x10] sm:$0x4] %v2091_v1  ;;  %v918_v15 = vshll.u32 %v1912_v9, 16  ;;  %v922_v1 = vshrl.u32 %v1912_v9, 16  ;;  %v1172_v38 = vrot.slane %v1912_v9, 1 }
 0x1a3   : > { %1756 = vmatmul.mubr.bf16.gmra.mrb[28].mxu0 %v1912_v9  ;;  %v920_v18 = vrot.slane %v918_v15, 1  ;;  %v1173_v40 = vsel %vm638_vm8, %v1171_v39, %v1172_v38  ;;  %v1304_v15 = vrot.slane %v2334_v13, 7 }
 0x1a4   : > { %1759 = vmatprep.mubr.msk.bf16.mxu0 %vm2092_vm0, %v2090_v0 }
 0x1a5   : > { %v921_v20 = vsel %vm376_vm7, %v916_v16, %v920_v18  ;;  %v924_v25 = vor.u32 %v922_v1, %v920_v18 }
 0x1a6   : > { %1724 = vmatmul.mubr.bf16.vlgmr.msra.gmra.mrb[12].mxu1 %v921_v20 }
 0x1a7   : > { %v1917_v21 = vld [vmem:[#allocation3 + $0x10] ss:$0 sps:$4 sm:$0x77]   ;;  %1764 = vmatpush3.bf16.msra.mxu1 %v1914_v19  ;;  %1727 = vmatprep.mubr.msk.bf16.mxu1 %vm2092_vm0, %v2090_v0 }
 0x1a8   : > { %v1915_v22 = vld [vmem:[#allocation3 + $0x10] ss:$0 sps:$4 sm:$0x33]   ;;  %1765 = vmatprep.subr.bf16.mxu1 %v2090_v0  ;;  %v926_v24 = vshll.u32 %v1917_v21, 16  ;;  %v930_v30 = vshrl.u32 %v1917_v21, 16  ;;  %v1174_v41 = vrot.slane %v1917_v21, 1 }
 0x1aa   : > { %v928_v26 = vrot.slane %v926_v24, 1  ;;  %v1175_v42 = vsel %vm638_vm8, %v1172_v38, %v1174_v41 }
 0x1ab   : > { %1760 = vmatmul.mubr.bf16.gmra.mrb[32].mxu0 %v1915_v22  ;;  %1766 = vmatpush3.bf16.msra.mxu1 %v1916_v23  ;;  %v1305_v23 = vsel %vm287_vm1, %v1303_v11, %v1304_v15 }
 0x1ac   : > { %1767 = vmatprep.subr.bf16.mxu1 %v2090_v0  ;;  %v929_v28 = vsel %vm376_vm7, %v924_v25, %v928_v26  ;;  %v932_v32 = vor.u32 %v930_v30, %v928_v26 }
 0x1ae   : > { %1728 = vmatmul.mubr.bf16.gmra.mrb[16].mxu1 %v929_v28  ;;  %v1325_v28 = vrot.slane %v2337_v14, 5 }
 0x1af   : > { %1768 = vmatpush3.bf16.msra.mxu1 %v1918_v27  ;;  %1731 = vmatprep.mubr.msk.bf16.mxu1 %vm2092_vm0, %v2090_v0 }
 0x1b0   : > { %1769 = vmatprep.subr.bf16.mxu1 %v2090_v0  ;;  %v1327_v14 = vsel %vm849_vm15, %v1325_v28, %v1326_v12 }
 0x1b3   : > { %1770 = vmatpush3.bf16.msra.mxu1 %v1919_v29 }
 0x1b4   : > { %1771 = vmatprep.subr.bf16.mxu1 %v2090_v0 }
 0x1b6   : > { %1732 = vmatmul.mubr.bf16.gmra.mrb[20].mxu1 %v932_v32 }
 0x1b7   : > { %1772 = vmatpush3.bf16.msra.mxu1 %v1920_v31  ;;  %1779 = vmatprep.mubr.msk.bf16.mxu1 %vm2092_vm0, %v2090_v0 }
 0x1b8   : > { %1773 = vmatprep.subr.bf16.mxu1 %v2090_v0 }
 0x1bb   : > { %1774 = vmatpush3.bf16.msra.mxu1 %v1921_v33 }
 0x1bc   : > { %1775 = vmatprep.subr.bf16.mxu1 %v2090_v0 }
 0x1bf   : > { %1776 = vmatpush3.bf16.msra.mxu1 %v1922_v34 }
 0x1c0   : > { %1777 = vmatprep.subr.bf16.mxu1 %v2090_v0 }
 0x1c3   : > { %1778 = vmatpush3.bf16.msra.mxu1 %v1923_v36 }
 0x1c6   : > { %1780 = vmatmul.mubr.bf16.vlgmr.msra.gmra.mrb[24].mxu1 %v1173_v40 }
 0x1c7   : > { %1783 = vmatprep.mubr.msk.bf16.mxu1 %vm2092_vm0, %v2090_v0 }
 0x1ce   : > { %1784 = vmatmul.mubr.bf16.gmra.mrb[28].mxu1 %v1175_v42 }
 0x1cf   : > { %1787 = vmatprep.mubr.msk.bf16.mxu1 %vm2092_vm0, %v2090_v0 }
 0x1d6   : > { %1788 = vmatmul.mubr.bf16.gmra.mrb[32].mxu1 %v1174_v41 }
 0x26e   : > { %v1128_v43 = vpop.f32.mrb[24].mxu0 }
 0x26f   : > { %v1753_v44 = vpop.f32.mrb[25].mxu0 }
 0x270   : > { %v1131_v45 = vpop.f32.mrb[26].mxu0 }
 0x271   : > { %v1754_v46 = vpop.f32.mrb[27].mxu0 }
 0x276   : > { %v1136_v47 = vpop.f32.mrb[28].mxu0 }
 0x277   : > { %v1757_v48 = vpop.f32.mrb[29].mxu0 }
 0x278   : > { %v1139_v49 = vpop.f32.mrb[30].mxu0 }
 0x279   : > { %v1758_v50 = vpop.f32.mrb[31].mxu0  ;;  %v1018_v51 = vpop.f32.mrb[12].mxu1 }
 0x27a   : > { %v1129_v52 = vadd.f32 %v1128_v43, %v1018_v51  ;;  %v1725_v53 = vpop.f32.mrb[13].mxu1 }
 0x27b   : > { %v1021_v54 = vpop.f32.mrb[14].mxu1 }
 0x27c   : > { %v1132_v55 = vadd.f32 %v1131_v45, %v1021_v54  ;;  %v1726_v57 = vpop.f32.mrb[15].mxu1 }
 0x27e   : > { %v1144_v56 = vpop.f32.mrb[32].mxu0 }
 0x27f   : > { %v1761_v58 = vpop.f32.mrb[33].mxu0 }
 0x280   : > { %v1147_v59 = vpop.f32.mrb[34].mxu0 }
 0x281   : > { %v1762_v61 = vpop.f32.mrb[35].mxu0  ;;  %v1026_v0 = vpop.f32.mrb[16].mxu1 }
 0x282   : > { %v1137_v60 = vadd.f32 %v1136_v47, %v1026_v0  ;;  %v1729_v62 = vpop.f32.mrb[17].mxu1 }
 0x283   : > { %v1029_v63 = vpop.f32.mrb[18].mxu1 }
 0x284   : > { %v1140_v2 = vadd.f32 %v1139_v49, %v1029_v63  ;;  %v1730_v3 = vpop.f32.mrb[19].mxu1 }
 0x289   : > { %v1034_v4 = vpop.f32.mrb[20].mxu1 }
 0x28a   : > { %v1145_v5 = vadd.f32 %v1144_v56, %v1034_v4  ;;  %v1733_v6 = vpop.f32.mrb[21].mxu1 }
 0x28b   : > { %v1037_v7 = vpop.f32.mrb[22].mxu1 }
 0x28c   : > { %v1734_v8 = vpop.f32.mrb[23].mxu1 }
 0x299   : > { %v1261_v9 = vpop.f32.mrb[24].mxu1 }
 0x29a   : > { %v1283_v16 = vadd.f32 %v1261_v9, %v1129_v52  ;;  %v1781_v18 = vpop.f32.mrb[25].mxu1 }
 0x29b   : > { %v1264_v19 = vpop.f32.mrb[26].mxu1 }
 0x29c   : > { %v1295_v20 = vadd.f32 %v1532_v10, %v1283_v16  ;;  %v1284_v21 = vadd.f32 %v1264_v19, %v1132_v55  ;;  %v1782_v22 = vpop.f32.mrb[27].mxu1 }
 0x29e   : > { %v1309_v1 = vadd.f32 %v1303_v11, %v1295_v20  ;;  %v1296_v24 = vadd.f32 %v1532_v10, %v1284_v21 }
 0x2a0   : > { %v1312_v25 = vmax.f32 %v1309_v1, 0.0  ;;  %v1310_v26 = vadd.f32 %v1305_v23, %v1296_v24 }
 0x2a1   : > { %v1269_v27 = vpop.f32.mrb[28].mxu1 }
 0x2a2   : > { %1315 = vst [vmem:[%s2482_s11 - $0x1] sm:$0xfe] %v1312_v25  ;;  %v1313_v13 = vmax.f32 %v1310_v26, 0.0  ;;  %v1285_v29 = vadd.f32 %v1269_v27, %v1137_v60  ;;  %v1785_v30 = vpop.f32.mrb[29].mxu1 }
 0x2a3   : > { %v1272_v31 = vpop.f32.mrb[30].mxu1 }
 0x2a4   : > { %1316 = vst [vmem:[%s2482_s11 + $0x7] sm:$0xff] %v1313_v13  ;;  %v1297_v32 = vadd.f32 %v1532_v10, %v1285_v29  ;;  %v1286_v33 = vadd.f32 %v1272_v31, %v1140_v2  ;;  %v1786_v34 = vpop.f32.mrb[31].mxu1 }
 0x2a6   : > { %v1311_v17 = vadd.f32 %v1304_v15, %v1297_v32  ;;  %v1331_v35 = vadd.f32 %v1325_v28, %v1297_v32  ;;  %v1318_v36 = vadd.f32 %v1532_v10, %v1286_v33 }
 0x2a8   : > { %v1314_v37 = vmax.f32 %v1311_v17, 0.0  ;;  %v1334_v38 = vmax.f32 %v1331_v35, 0.0  ;;  %v1332_v39 = vadd.f32 %v1327_v14, %v1318_v36 }
 0x2a9   : > { %v1277_v40 = vpop.f32.mrb[32].mxu1 }
 0x2aa   : > { %1317 = vst [vmem:[%s2482_s11 + $0xf] sm:$0x1] %v1314_v37  ;;  %1535 = vst [vmem:[%s2482_s11 + $0xd] sm:$0xf8] %v1334_v38  ;;  %v1335_v41 = vmax.f32 %v1332_v39, 0.0  ;;  %v1287_v42 = vadd.f32 %v1277_v40, %v1145_v5  ;;  %v1789_v43 = vpop.f32.mrb[33].mxu1 }
 0x2ab   : > { %v1280_v44 = vpop.f32.mrb[34].mxu1 }
 0x2ac   : > { %1536 = vst [vmem:[%s2482_s11 + $0x15] sm:$0xff] %v1335_v41  ;;  %v1319_v45 = vadd.f32 %v1532_v10, %v1287_v42  ;;  %v1790_v46 = vpop.f32.mrb[35].mxu1 }
 0x2ae   : > { %v1333_v47 = vadd.f32 %v1326_v12, %v1319_v45 }
 0x2b0   : > { %v1336_v48 = vmax.f32 %v1333_v47, 0.0 }
 0x2b2   : > { %1537 = vst [vmem:[%s2482_s11 + $0x1d] sm:$0x7] %v1336_v48 }
 0x2b3   : > { %2024 = shalt.err (!%p2021_p2)
}
 0x2b4   : > { %s2025_s6 = scalar_lea.hbm %s2497_s9, 512  ;;  %s2029_s8 = scalar_lea.hbm %s2547_s5, 1024 }
 0x2b5   : > { %p2026_p13 = scmp.ne.s32.totalorder %s2497_s9, %s2025_s6  ;;  %p2030_p4 = scmp.lt.u32.totalorder %s2497_s9, %s2547_s5 }
 0x2b6   : > { %p2031_p5 = scmp.lt.u32.totalorder %s2029_s8, %s2025_s6  ;;  %p2033_p11 = scmp.lt.u32.totalorder %s2025_s6, %s2497_s9 }
 0x2b7   : > { %p2027_p6 = pnand %p2026_p13, %p2565_p0 }
 0x2b8   : > { %p2032_p8 = por %p2031_p5, %p2030_p4 }
 0x2b9   : > { %p2028_p10 = pneg %p2027_p6 }
 0x2ba   : > { %p2034_p1 = por %p2033_p11, %p2032_p8 }
 0x2bc   : > { %p2035_p3 = pnand %p2034_p1, %p2028_p10 }
 0x2be   : > { %2038 = shalt.err (!%p2035_p3)
}
 0x2bf   : > { %s2094_s30 = smov 128   ;;  %s2095_s15 = smov 8  }
 0x2c0   : > { %1801 = dma.vmem_to_hbm [thread:$0]  (%p2565_p0), %s2492_s28, 512, %s2497_s9, %s1342_s12, %s2094_s30, %s2094_s30, %s2095_s15  }
 0x2c1 PF: > { %s1371_s16 = sand.u32 1, %s2069_s18   ;;  %p2566_p7 = scmp.ne.s32.totalorder %s2552_s25, 0 }
 0x2c2   : > { %p2567_p9 = scmp.ge.s32.totalorder %s2081_s21, 2  ;;  %s1372_s13 = scalar_lea.sflag [#allocation6], %s1371_s16 }
 0x2c4   : > { %p1815_p12 = pnand %p2567_p9, %p2566_p7 }
 0x2c6   : > { %2064 = dma.done.wait (!%p1815_p12), %s1372_s13, 512  }
 0x2c7   : > { %2066 = vsyncadd (!%p1815_p12), %s1372_s13, 4294966784  ;;  %p19_p2 = scmp.ge.s32.totalorder %s2236_s14, 4   ;;  %s2568_s18 = smov %s2073_s19 }
 0x2c8   : > { %s2569_s19 = smov %s2077_s20  ;;  %s2570_s20 = smov %s2252_s27 }
 0x2c9   : > { %s2571_s21 = smov %s2236_s14  ;;  %21 = sbr.rel (!%p19_p2) target bundleno = 6 (0x6), region = 99 }
 0x2d0   :  { %1377 = vsyncpa [#allocation5], 1 }
 0x2d1   :  { %1379 = vsyncpa [#allocation5 + $0x1], 1 }
 0x2d2   :  { %1380 = vsyncpa [#allocation8], 1 }
 0x2d3   :  { %1381 = vsyncpa [#allocation6], 1 }
 0x2d4   :  { %1383 = vsyncpa [#allocation6 + $0x1], 1 }

</bundles_post_ra>
